<compile_context>
chip_gen: v5e
topology: v5e:2x2
jax: 0.10.0
libtpu: 0.0.40
codegen_flags: <defaults>
</compile_context>

<pallas_src>
import functools

import jax
import jax.numpy as jnp
from jax.experimental import pallas as pl
from jax.experimental.pallas import tpu as pltpu


# ---------------------------------------------------------------------------
# 'bn' : BatchNorm2d (training-mode batch statistics), affine=True.
# One grid step per channel; block = (N, 1, H, W); gamma/beta scalars in SMEM.
# ---------------------------------------------------------------------------
def _bn_kernel(x_ref, g_ref, b_ref, o_ref, *, eps):
    c = pl.program_id(0)
    x = x_ref[...].astype(jnp.float32)              # (N, 1, H, W) for channel c
    cnt = x.size                                    # static: N*H*W
    s = jnp.sum(x)
    s2 = jnp.sum(x * x)
    mean = s / cnt
    var = jnp.maximum(s2 / cnt - mean * mean, 0.0)  # biased var (PyTorch norm)
    inv = jax.lax.rsqrt(var + eps)
    g = g_ref[c]                                    # scalar load from SMEM
    b = b_ref[c]
    o_ref[...] = ((x - mean) * (inv * g) + b).astype(o_ref.dtype)


def _batch_norm(x, gamma, beta, eps):
    N, C, H, W = x.shape
    return pl.pallas_call(
        functools.partial(_bn_kernel, eps=eps),
        out_shape=jax.ShapeDtypeStruct((N, C, H, W), x.dtype),
        grid_spec=pltpu.PrefetchScalarGridSpec(
            num_scalar_prefetch=0,
            grid=(C,),
            in_specs=[
                pl.BlockSpec((N, 1, H, W), lambda c: (0, c, 0, 0)),
                pl.BlockSpec(memory_space=pltpu.MemorySpace.SMEM),   # gamma (C,)
                pl.BlockSpec(memory_space=pltpu.MemorySpace.SMEM),   # beta  (C,)
            ],
            out_specs=pl.BlockSpec((N, 1, H, W), lambda c: (0, c, 0, 0)),
        ),
        compiler_params=pltpu.CompilerParams(dimension_semantics=("parallel",)),
    )(x, gamma, beta)


# ---------------------------------------------------------------------------
# 'in' : InstanceNorm2d, affine=False.
# x viewed as (N, C, HW); block = (1, Ct, HW) (lane-dense last axis);
# grid = (N, C // Ct); per-row stats over the spatial axis.
# ---------------------------------------------------------------------------
def _in_kernel(x_ref, o_ref, *, eps):
    x = x_ref[...].astype(jnp.float32)              # (1, Ct, HW)
    cnt = x.shape[-1]
    s = jnp.sum(x, axis=-1, keepdims=True)
    s2 = jnp.sum(x * x, axis=-1, keepdims=True)
    mean = s / cnt
    var = jnp.maximum(s2 / cnt - mean * mean, 0.0)
    o_ref[...] = ((x - mean) * jax.lax.rsqrt(var + eps)).astype(o_ref.dtype)


def _pick_channel_tile(C, HW, budget_bytes=4 << 20):
    """Largest channel tile (= C, or a multiple-of-8 divisor of C) within budget."""
    if C * HW * 4 <= budget_bytes:
        return C
    best = None
    for cand in range(8, C, 8):
        if C % cand == 0 and cand * HW * 4 <= budget_bytes:
            best = cand
    # TODO(synk): if nothing fits, the spatial axis should be tiled instead
    # (two-pass stats or sum/sumsq accumulators in VMEM scratch).
    return best if best is not None else C


def _instance_norm(x, eps):
    N, C, H, W = x.shape
    HW = H * W
    x3 = x.reshape(N, C, HW)                        # free, contiguous view
    Ct = _pick_channel_tile(C, HW)
    out = pl.pallas_call(
        functools.partial(_in_kernel, eps=eps),
        out_shape=jax.ShapeDtypeStruct((N, C, HW), x.dtype),
        grid_spec=pltpu.PrefetchScalarGridSpec(
            num_scalar_prefetch=0,
            grid=(N, C // Ct),
            in_specs=[pl.BlockSpec((1, Ct, HW), lambda n, j: (n, j, 0))],
            out_specs=pl.BlockSpec((1, Ct, HW), lambda n, j: (n, j, 0)),
        ),
        compiler_params=pltpu.CompilerParams(
            dimension_semantics=("parallel", "parallel")),
    )(x3)
    return out.reshape(N, C, H, W)


# ---------------------------------------------------------------------------
# 'gn' : GroupNorm(32 groups, eps=1e-6, affine=True).
# x viewed as (N, G, Cg, HW); grid over N only -> all groups of one sample per
# step; stats per group over (Cg, HW); per-channel affine from a small,
# index-invariant (1, G, Cg, 1) VMEM block.
# ---------------------------------------------------------------------------
def _gn_kernel(x_ref, g_ref, b_ref, o_ref, *, eps):
    x = x_ref[...].astype(jnp.float32)              # (1, G, Cg, HW)
    cnt = x.shape[2] * x.shape[3]
    s = jnp.sum(x, axis=(2, 3), keepdims=True)
    s2 = jnp.sum(x * x, axis=(2, 3), keepdims=True)
    mean = s / cnt
    var = jnp.maximum(s2 / cnt - mean * mean, 0.0)
    y = (x - mean) * jax.lax.rsqrt(var + eps)
    o_ref[...] = (y * g_ref[...] + b_ref[...]).astype(o_ref.dtype)


def _group_norm(x, gamma, beta, num_groups, eps):
    N, C, H, W = x.shape
    assert C % num_groups == 0, "channels must be divisible by num_groups"
    G = num_groups
    Cg = C // G
    HW = H * W
    xg = x.reshape(N, G, Cg, HW)                    # free, contiguous view
    gg = gamma.reshape(1, G, Cg, 1)
    bb = beta.reshape(1, G, Cg, 1)
    out = pl.pallas_call(
        functools.partial(_gn_kernel, eps=eps),
        out_shape=jax.ShapeDtypeStruct((N, G, Cg, HW), x.dtype),
        grid_spec=pltpu.PrefetchScalarGridSpec(
            num_scalar_prefetch=0,
            grid=(N,),
            in_specs=[
                pl.BlockSpec((1, G, Cg, HW), lambda n: (n, 0, 0, 0)),
                pl.BlockSpec((1, G, Cg, 1), lambda n: (0, 0, 0, 0)),
                pl.BlockSpec((1, G, Cg, 1), lambda n: (0, 0, 0, 0)),
            ],
            out_specs=pl.BlockSpec((1, G, Cg, HW), lambda n: (n, 0, 0, 0)),
        ),
        compiler_params=pltpu.CompilerParams(dimension_semantics=("parallel",)),
    )(xg, gg, bb)
    return out.reshape(N, C, H, W)


# ---------------------------------------------------------------------------
# NormLayer wrapper (mirrors the PyTorch module forward semantics).
# ---------------------------------------------------------------------------
class NormLayer:
    def __init__(self, channels, norm_type='bn', key=None):
        norm_type = norm_type.lower()
        assert norm_type in ('bn', 'in', 'gn', 'none'), \
            'Norm type {} not support.'.format(norm_type)
        self.norm_type = norm_type
        self.channels = channels
        if norm_type in ('bn', 'gn'):
            # PyTorch default init is ones/zeros; small perturbations are used
            # so the affine path is actually exercised by the checks below.
            if key is None:
                key = jax.random.PRNGKey(0)
            kg, kb = jax.random.split(key)
            self.gamma = 1.0 + 0.1 * jax.random.normal(kg, (channels,), jnp.float32)
            self.beta = 0.1 * jax.random.normal(kb, (channels,), jnp.float32)
        else:
            self.gamma = None
            self.beta = None
        self.eps = 1e-6 if norm_type == 'gn' else 1e-5
        self.num_groups = 32
        # TODO(synk): PyTorch BatchNorm2d training-mode running_mean/running_var
        # buffer updates (a stateful side effect) are not reproduced; the
        # forward output (batch statistics) matches exactly.

    def __call__(self, x):
        # x: (N, C, H, W) float32
        N, C, H, W = x.shape
        assert C == self.channels
        if self.norm_type == 'none':
            return x                                 # identity; no HBM copy
        if self.norm_type == 'bn':
            return _batch_norm(x, self.gamma, self.beta, self.eps)
        if self.norm_type == 'in':
            return _instance_norm(x, self.eps)
        return _group_norm(x, self.gamma, self.beta, self.num_groups, self.eps)


# ---------------------------------------------------------------------------
# Pure-JAX references for verification.
# ---------------------------------------------------------------------------
def _bn_ref(x, gamma, beta, eps=1e-5):
    mean = jnp.mean(x, axis=(0, 2, 3), keepdims=True)
    var = jnp.mean((x - mean) ** 2, axis=(0, 2, 3), keepdims=True)
    y = (x - mean) * jax.lax.rsqrt(var + eps)
    return y * gamma.reshape(1, -1, 1, 1) + beta.reshape(1, -1, 1, 1)


def _in_ref(x, eps=1e-5):
    mean = jnp.mean(x, axis=(2, 3), keepdims=True)
    var = jnp.mean((x - mean) ** 2, axis=(2, 3), keepdims=True)
    return (x - mean) * jax.lax.rsqrt(var + eps)


def _gn_ref(x, gamma, beta, groups=32, eps=1e-6):
    N, C, H, W = x.shape
    xg = x.reshape(N, groups, C // groups, H, W)
    mean = jnp.mean(xg, axis=(2, 3, 4), keepdims=True)
    var = jnp.mean((xg - mean) ** 2, axis=(2, 3, 4), keepdims=True)
    y = ((xg - mean) * jax.lax.rsqrt(var + eps)).reshape(N, C, H, W)
    return y * gamma.reshape(1, -1, 1, 1) + beta.reshape(1, -1, 1, 1)


if __name__ == "__main__":
    key = jax.random.PRNGKey(0)
    kx1, kx2, kp1, kp2 = jax.random.split(key, 4)

    # --- default path: BatchNorm2d ('bn'), channels=4, input (2, 4, 16, 16) ---
    x = jax.random.normal(kx1, (2, 4, 16, 16), jnp.float32)
    layer_bn = NormLayer(channels=4, norm_type='bn', key=kp1)
    y_bn = jax.block_until_ready(layer_bn(x))
    ref_bn = _bn_ref(x, layer_bn.gamma, layer_bn.beta)
    assert jnp.allclose(y_bn, ref_bn, rtol=1e-4, atol=1e-4), "bn mismatch"

    # --- InstanceNorm2d ('in') on the same input ---
    layer_in = NormLayer(channels=4, norm_type='in')
    y_in = jax.block_until_ready(layer_in(x))
    ref_in = _in_ref(x)
    assert jnp.allclose(y_in, ref_in, rtol=1e-4, atol=1e-4), "in mismatch"

    # --- GroupNorm ('gn'): channels divisible by 32 -> (2, 64, 8, 8) ---
    xg = jax.random.normal(kx2, (2, 64, 8, 8), jnp.float32)
    layer_gn = NormLayer(channels=64, norm_type='gn', key=kp2)
    y_gn = jax.block_until_ready(layer_gn(xg))
    ref_gn = _gn_ref(xg, layer_gn.gamma, layer_gn.beta)
    assert jnp.allclose(y_gn, ref_gn, rtol=1e-4, atol=1e-4), "gn mismatch"

    # --- 'none' path ---
    layer_none = NormLayer(channels=4, norm_type='none')
    y_none = jax.block_until_ready(layer_none(x))
    assert jnp.allclose(y_none, x), "none mismatch"

    print("KERNEL_OK")
</pallas_src>

<mosaic_0001>
module attributes {stable_mosaic.version = 11 : i64} {
  func.func @_bn_kernel(%arg0: i32, %arg1: memref<2x1x16x16xf32, #tpu.memory_space<vmem>>, %arg2: memref<4xf32, #tpu.memory_space<smem>>, %arg3: memref<4xf32, #tpu.memory_space<smem>>, %arg4: memref<2x1x16x16xf32, #tpu.memory_space<vmem>>) attributes {dimension_semantics = [#tpu.dimension_semantics<parallel>], iteration_bounds = array<i64: 4>, scalar_prefetch = 0 : i64, scratch_operands = 0 : i64, tpu.core_type = #tpu.core_type<tc>, window_params = [{transform_indices = @transform_0, window_bounds = array<i64: 2, 1, 16, 16>}, {transform_indices = @transform_1, window_bounds = array<i64: 4>}, {transform_indices = @transform_2, window_bounds = array<i64: 4>}, {transform_indices = @transform_3, window_bounds = array<i64: 2, 1, 16, 16>}]} {
    %c0 = arith.constant 0 : index
    %c0_0 = arith.constant 0 : index
    %c0_1 = arith.constant 0 : index
    %c0_2 = arith.constant 0 : index
    %0 = vector.load %arg1[%c0, %c0_0, %c0_1, %c0_2] : memref<2x1x16x16xf32, #tpu.memory_space<vmem>>, vector<2x1x16x16xf32>
    %1 = vector.shape_cast %0 : vector<2x1x16x16xf32> to vector<1x2x1x16x16xf32>
    %cst = arith.constant dense<0.000000e+00> : vector<1xf32>
    %2 = vector.multi_reduction <add>, %1, %cst [1, 2, 3, 4] : vector<1x2x1x16x16xf32> to vector<1xf32>
    %3 = vector.shape_cast %2 : vector<1xf32> to vector<1x1x1x1x1xf32>
    %4 = vector.extract %3[0, 0, 0, 0, 0] : f32 from vector<1x1x1x1x1xf32>
    %5 = arith.mulf %0, %0 : vector<2x1x16x16xf32>
    %6 = vector.shape_cast %5 : vector<2x1x16x16xf32> to vector<1x2x1x16x16xf32>
    %cst_3 = arith.constant dense<0.000000e+00> : vector<1xf32>
    %7 = vector.multi_reduction <add>, %6, %cst_3 [1, 2, 3, 4] : vector<1x2x1x16x16xf32> to vector<1xf32>
    %8 = vector.shape_cast %7 : vector<1xf32> to vector<1x1x1x1x1xf32>
    %9 = vector.extract %8[0, 0, 0, 0, 0] : f32 from vector<1x1x1x1x1xf32>
    %cst_4 = arith.constant 5.120000e+02 : f32
    %10 = arith.divf %4, %cst_4 : f32
    %cst_5 = arith.constant 5.120000e+02 : f32
    %11 = arith.divf %9, %cst_5 : f32
    %12 = arith.mulf %10, %10 : f32
    %13 = arith.subf %11, %12 : f32
    %cst_6 = arith.constant 0.000000e+00 : f32
    %14 = arith.maximumf %13, %cst_6 : f32
    %cst_7 = arith.constant 9.99999974E-6 : f32
    %15 = arith.addf %14, %cst_7 : f32
    %16 = math.rsqrt %15 : f32
    %17 = arith.index_cast %arg0 : i32 to index
    %18 = memref.load %arg2[%17] : memref<4xf32, #tpu.memory_space<smem>>
    %19 = arith.index_cast %arg0 : i32 to index
    %20 = memref.load %arg3[%19] : memref<4xf32, #tpu.memory_space<smem>>
    %21 = vector.broadcast %10 : f32 to vector<2x1x16x16xf32>
    %22 = arith.subf %0, %21 : vector<2x1x16x16xf32>
    %23 = arith.mulf %16, %18 : f32
    %24 = vector.broadcast %23 : f32 to vector<2x1x16x16xf32>
    %25 = arith.mulf %22, %24 : vector<2x1x16x16xf32>
    %26 = vector.broadcast %20 : f32 to vector<2x1x16x16xf32>
    %27 = arith.addf %25, %26 : vector<2x1x16x16xf32>
    %c0_8 = arith.constant 0 : index
    %c0_9 = arith.constant 0 : index
    %c0_10 = arith.constant 0 : index
    %c0_11 = arith.constant 0 : index
    %28 = vector.load %arg4[%c0_8, %c0_9, %c0_10, %c0_11] : memref<2x1x16x16xf32, #tpu.memory_space<vmem>>, vector<2x1x16x16xf32>
    tpu.vector_store %arg4[%c0_8, %c0_9, %c0_10, %c0_11], %27 {strides = array<i32>} : memref<2x1x16x16xf32, #tpu.memory_space<vmem>>, vector<2x1x16x16xf32>,
    return
  }
  func.func @transform_0(%arg0: i32) -> (i32, i32, i32, i32) {
    %c0_i32 = arith.constant 0 : i32
    %c0_i32_0 = arith.constant 0 : i32
    %c0_i32_1 = arith.constant 0 : i32
    %c0_i32_2 = arith.constant 0 : i32
    return %c0_i32, %arg0, %c0_i32_0, %c0_i32_1 : i32, i32, i32, i32
  }
  func.func @transform_1(%arg0: i32) -> i32 {
    %c0_i32 = arith.constant 0 : i32
    %c0_i32_0 = arith.constant 0 : i32
    return %c0_i32 : i32
  }
  func.func @transform_2(%arg0: i32) -> i32 {
    %c0_i32 = arith.constant 0 : i32
    %c0_i32_0 = arith.constant 0 : i32
    return %c0_i32 : i32
  }
  func.func @transform_3(%arg0: i32) -> (i32, i32, i32, i32) {
    %c0_i32 = arith.constant 0 : i32
    %c0_i32_0 = arith.constant 0 : i32
    %c0_i32_1 = arith.constant 0 : i32
    %c0_i32_2 = arith.constant 0 : i32
    return %c0_i32, %arg0, %c0_i32_0, %c0_i32_1 : i32, i32, i32, i32
  }
}

</mosaic_0001>

<bundles_post_ra>
// kernel: tpu_custom_call.1
= control target key start
LH: loop header
LB: loop body
LE: loop exit
PB: predicated region body
PF: predicated region fallthrough
CT: control target
= control target key end

     0   :  { %8 = vsyncpa [#allocation3], 0  ;;  %s908_s0 = inlined_call_operand.hbm [shape: f32[2,4,16,16], index: 0, kind: input, shape index: {}]   ;;  %s909_s1 = inlined_call_operand.hbm [shape: f32[4], index: 1, kind: input, shape index: {}]   ;;  %s910_s2 = inlined_call_operand.vmem [shape: f32[4], index: 2, kind: input, shape index: {}]   ;;  %s911_s3 = inlined_call_operand.hbm [shape: f32[2,4,16,16], index: 3, kind: output, shape index: {}]  }
   0x1   :  { %10 = vsyncpa [#allocation3 + $0x1], 0 }
   0x2   :  { %11 = vsyncpa [#allocation5], 0 }
   0x3   :  { %12 = vsyncpa [#allocation6], 0 }
   0x4   :  { %13 = vsyncpa [#allocation4], 0 }
   0x5   :  { %15 = vsyncpa [#allocation4 + $0x1], 0  ;;  %s715_s12 = smov 0   ;;  %s717_s13 = smov 0  }
   0x6   :  { %s719_s14 = smov 0   ;;  %s721_s15 = smov 0  }
   0x7 LB: > { %s736_s16 = sadd.s32 4294967295, %s676_s15   ;;  %s476_s17 = sadd.s32 4294967294, %s676_s15   ;;  %s676_s15 = sphi %s721_s15, %s920_s15   ;;  %s672_s14 = sphi %s719_s14, %s919_s14   ;;  %s668_s13 = sphi %s717_s13, %s918_s13   ;;  %s664_s12 = sphi %s715_s12, %s917_s12  }
   0x8   : > { %s740_s18 = sadd.s32 1, %s676_s15   ;;  %s28_s19 = sadd.s32 1, %s672_s14 }
   0x9   : > { %s25_s20 = ssub.s32 %s676_s15, %s740_s18  ;;  %p35_p0 = scmp.ne.s32.totalorder %s672_s14, %s668_s13 }
   0xa   : > { %p26_p1 = scmp.eq.s32.totalorder %s25_s20, 0  ;;  %p36_p2 = scmp.eq.s32.totalorder %s676_s15, 0 }
   0xb   : > { %p41_p3 = scmp.ne.s32.totalorder %s668_s13, %s664_s12  ;;  %p42_p4 = scmp.eq.s32.totalorder %s736_s16, 0 }
   0xc   : > { %s752_s21 = scalar_select %p26_p1, %s672_s14, %s28_s19  }
   0xd   : > { %p754_p5 = por %p36_p2, %p35_p0  ;;  %p760_p6 = por %p42_p4, %p41_p3 }
   0xe   : > { %p107_p7 = scmp.eq.s32.totalorder %s736_s16, 3  ;;  %p113_p8 = scmp.eq.s32.totalorder %s476_s17, 3 }
   0xf   : > { %p477_p9 = scmp.ge.s32.totalorder %s676_s15, 1  ;;  %p120_p10 = scmp.lt.s32.totalorder %s676_s15, 5 }
  0x10   : > { %p767_p11 = por %p107_p7, %p35_p0  ;;  %p771_p12 = por %p113_p8, %p41_p3 }
  0x11   : > { %p775_p13 = pnand %p477_p9, %p120_p10  ;;  %s132_s29 = sshll.u32 %s909_s1, 4  ;;  %s133_s29 = int_to_ptr.hbm [resolvable:$true] %s132_s29 }
  0x12   : > { %s142_s5 = sshll.u32 %s910_s2, 4  ;;  %s678_s6 = smov [#allocation7]   ;;  %s143_s5 = int_to_ptr.vmem [resolvable:$true] %s142_s5 }
  0x13   : > { %p531_p1 = pneg %p775_p13  ;;  %s679_s7 = smov [#allocation8]  }
  0x14   : > { %p480_p2 = scmp.ge.s32.totalorder %s676_s15, 4 }
  0x15   : > { %p532_p0 = pnand %p531_p1, %p42_p4 }
  0x16   : > { %149 = sbr.rel (%p480_p2) target bundleno = 41 (0x29), region = 24 }
  0x17   : > { %534 = dma.hbm_to_smem (!%p532_p0), %s133_s29, 16, %s678_s6, [#allocation5]  }
  0x18   : > { %537 = dma.vmem_to_smem (!%p532_p0), %s143_s5, 16, %s679_s7, [#allocation6]  }
  0x1b   : > { %s153_s8 = sand.u32 1, %s672_s14   ;;  %s496_s9 = sshll.u32 %s676_s15, 4 }
  0x1c   : > { %s481_s10 = sshll.u32 %s153_s8, 5  ;;  %s162_s19 = scalar_lea.hbm %s908_s0, %s496_s9 }
  0x1d   : > { %s510_s20 = scalar_select %p754_p5, [#allocation0], [#allocation14] }
  0x1e   : > { %s175_s27 = sshll.u32 %s162_s19, 4  ;;  %s157_s28 = scalar_lea.vmem [#allocation2], %s481_s10  ;;  %s176_s27 = int_to_ptr.hbm [resolvable:$true] %s175_s27 }
  0x1f   : > { %s177_s29 = sshll.u32 %s157_s28, 4  ;;  %s167_s30 = sld [smem:[%s510_s20]]   ;;  %s178_s29 = int_to_ptr.vmem [resolvable:$true] %s177_s29 }
  0x20   : > { %s680_s4 = smov 1024   ;;  %s681_s5 = smov 256  }
  0x21   : > { %511 = sst [smem:[#allocation11]] (%p754_p5), %s680_s4  ;;  %s682_s6 = smov 2  }
  0x22   : > { %512 = sst [smem:[#allocation11 + $0x1]] (%p754_p5), %s681_s5  ;;  %s683_s7 = smov 128  }
  0x23   : > { %513 = sst [smem:[#allocation11 + $0x2]] (%p754_p5), %s682_s6  ;;  %s684_s11 = smov 8  }
  0x24   : > { %514 = sst [smem:[#allocation11 + $0x3]] (%p754_p5), %s683_s7  ;;  %s154_s17 = scalar_lea.sflag [#allocation3], %s153_s8 }
  0x25   : > { %s484_s9 = sshll.u32 %s167_s30, 26  ;;  %515 = sst [smem:[#allocation11 + $0x4]] (%p754_p5), %s683_s7 }
  0x26   : > { %s485_s10 = sadd.s32 134217728, %s484_s9  ;;  %516 = sst [smem:[#allocation11 + $0x5]] (%p754_p5), %s684_s11 }
  0x27   : > { %s685_s19 = smov [#allocation10]  }
  0x28   : > { %517 = dma.general (%p754_p5), %s176_s27, 512, %s178_s29, %s154_s17, %s685_s19, [#allocation11], %s485_s10, 0  }
  0x29 PF: > { %202 = sbr.rel (%p775_p13) target bundleno = 347 (0x15b), region = 32  ;;  %s814_s20 = sand.u32 (!%p775_p13), 1, %s668_s13  }
  0x2a   : > { %s487_s28 = sshll.u32 (!%p775_p13), %s814_s20, 5  ;;  %s205_s30 = scalar_lea.sflag (!%p775_p13), [#allocation3], %s814_s20 }
  0x2b   : > { %s208_s4 = scalar_lea.vmem (!%p775_p13), [#allocation2], %s487_s28 }
  0x2e   : > { %647 = dma.done.wait (%p760_p6), %s205_s30, 512  }
  0x2f   : > { %649 = vsyncadd (%p760_p6), %s205_s30, 4294966784 }
  0x30   : > { %651 = dma.done.wait (%p42_p4), [#allocation5], 16  }
  0x31   : > { %653 = vsyncadd (%p42_p4), [#allocation5], 4294967280 }
  0x32   : > { %655 = dma.done.wait (%p42_p4), [#allocation6], 16  }
  0x33   : > { %657 = vsyncadd (%p42_p4), [#allocation6], 4294967280 }
  0x34   : > { %224 = sfence }
  0x35   : > { %v832_v0 = vld [vmem:[%s208_s4] sm:$0xff]  ;;  %v834_v1 = vld [vmem:[%s208_s4 + $0x8] sm:$0xff]  ;;  %v836_v2 = vld [vmem:[%s208_s4 + $0x10] sm:$0xff]  ;;  %vm247_vm0 = vcmask 130048   ;;  %v686_v22 = vmov 512.0   ;;  %s687_s6 = smov 0.0  }
  0x36   : > { %v838_v3 = vld [vmem:[%s208_s4 + $0x18] sm:$0xff]  ;;  %v248_v4 = vsel %vm247_vm0, %v832_v0, 0.0  ;;  %v249_v5 = vsel %vm247_vm0, %v834_v1, 0.0  ;;  %v251_v6 = vsel %vm247_vm0, %v836_v2, 0.0  ;;  %v264_v7 = vmul.f32 %v832_v0, %v832_v0  ;;  %s318_s10 = sld [smem:[#allocation7 + %s736_s16]]  ;;  %s242_s30 = scalar_lea.vmem [#allocation9], %s487_s28 }
  0x37   : > { %v250_v8 = vadd.f32 %v249_v5, %v248_v4  ;;  %v265_v9 = vmul.f32 %v834_v1, %v834_v1  ;;  %v266_v10 = vmul.f32 %v836_v2, %v836_v2  ;;  %v253_v11 = vsel %vm247_vm0, %v838_v3, 0.0  ;;  %s319_s11 = sld [smem:[#allocation8 + %s736_s16]]  ;;  %s341_s4 = scalar_lea.sflag [#allocation4], %s814_s20 }
  0x38   : > { %v268_v12 = vsel %vm247_vm0, %v264_v7, 0.0  ;;  %v267_v15 = vmul.f32 %v838_v3, %v838_v3  ;;  %596 = vrcp.f32 %v686_v22 }
  0x39   : > { %v252_v13 = vadd.f32 %v251_v6, %v250_v8  ;;  %v269_v14 = vsel %vm247_vm0, %v265_v9, 0.0  ;;  %v271_v17 = vsel %vm247_vm0, %v266_v10, 0.0 }
  0x3a   : > { %v270_v16 = vadd.f32 %v269_v14, %v268_v12  ;;  %v273_v20 = vsel %vm247_vm0, %v267_v15, 0.0 }
  0x3b   : > { %v254_v18 = vadd.f32 %v253_v11, %v252_v13 }
  0x3c   : > { %v272_v19 = vadd.f32 %v271_v17, %v270_v16 }
  0x3d   : > { %255 = vadd.xlane.f32.xlu0 %v254_v18  ;;  %v331_v57 = vstv %s319_s11 }
  0x3e   : > { %v274_v21 = vadd.f32 %v273_v20, %v272_v19  ;;  %v597_v23 = vpop.eup %596 }
  0x3f   : > { %v285_v27 = vmul.f32 512.0, %v597_v23  ;;  %vm289_vm1 = vweird.f32 %v597_v23 }
  0x41   : > { %v286_v30 = vsub.f32 1.0, %v285_v27 }
  0x43   : > { %v287_v36 = vmul.f32 %v597_v23, %v286_v30 }
  0x45   : > { %275 = vadd.xlane.f32.xlu0 %v274_v21  ;;  %v288_v39 = vadd.f32 %v597_v23, %v287_v36 }
  0x47   : > { %v290_v42 = vsel %vm289_vm1, %v597_v23, %v288_v39 }
  0xb0   : > { %v256_v24 = vpop.xlane.xlu0 %255 }
  0xb1   : > { %v257_v25 = vrot.slane %v256_v24, 4 }
  0xb3   : > { %v258_v26 = vadd.f32 %v257_v25, %v256_v24 }
  0xb5   : > { %v259_v28 = vrot.slane %v258_v26, 2 }
  0xb7   : > { %v260_v29 = vadd.f32 %v259_v28, %v258_v26 }
  0xb8   : > { %v276_v31 = vpop.xlane.xlu0 %275 }
  0xb9   : > { %v277_v32 = vrot.slane %v276_v31, 4  ;;  %v261_v33 = vrot.slane %v260_v29, 1 }
  0xbb   : > { %v278_v34 = vadd.f32 %v277_v32, %v276_v31  ;;  %v262_v35 = vadd.f32 %v261_v33, %v260_v29 }
  0xbd   : > { %v279_v37 = vrot.slane %v278_v34, 2  ;;  %498 = vpush %v262_v35 }
  0xbf   : > { %v280_v38 = vadd.f32 %v279_v37, %v278_v34 }
  0xc1   : > { %v281_v40 = vrot.slane %v280_v38, 1 }
  0xc3   : > { %v282_v41 = vadd.f32 %v281_v40, %v280_v38 }
  0xc5   : > { %500 = vpush %v282_v41 }
  0xc6   : > { %502 = vpush %v290_v42 }
  0xee   : > { %s499_s22 = spop %498 }
  0xf6   : > { %s501_s23 = spop %500 }
  0xf7   : > { %s503_s26 = spop %502 }
  0xf8   : > { %s292_s8 = smul.f32 %s503_s26, %s499_s22 }
  0xf9   : > { %s301_s27 = smul.f32 %s503_s26, %s501_s23 }
  0xfa   : > { %s302_s29 = smul.f32 %s292_s8, %s292_s8  ;;  %v320_v51 = vstv %s292_s8 }
  0xfb   : > { %v321_v52 = vsub.f32 %v832_v0, %v320_v51  ;;  %v322_v53 = vsub.f32 %v834_v1, %v320_v51  ;;  %v323_v54 = vsub.f32 %v836_v2, %v320_v51  ;;  %v324_v55 = vsub.f32 %v838_v3, %v320_v51 }
  0xfc   : > { %s303_s5 = ssub.f32 %s301_s27, %s302_s29 }
  0xfe   : > { %s304_s7 = smax.f32 %s687_s6, %s303_s5 }
  0xff   : > { %s305_s9 = sadd.f32 1e-05, %s304_s7 }
 0x101   : > { %v306_v43 = vstv %s305_s9 }
 0x102   : > { %598 = vrsqrt.f32 %v306_v43  ;;  %vm313_vm3 = vweird.f32 %v306_v43 }
 0x108   : > { %v599_v44 = vpop.eup %598 }
 0x109   : > { %v308_v45 = vmul.f32 %v599_v44, %v306_v43  ;;  %vm314_vm2 = vweird.f32 %v599_v44 }
 0x10a   : > { %vm315_vm4 = vmor %vm313_vm3, %vm314_vm2 }
 0x10b   : > { %v309_v46 = vmul.f32 %v599_v44, %v308_v45 }
 0x10d   : > { %v310_v47 = vmul.f32 0.5, %v309_v46 }
 0x10f   : > { %v311_v48 = vsub.f32 1.5, %v310_v47 }
 0x111   : > { %v312_v49 = vmul.f32 %v599_v44, %v311_v48 }
 0x113   : > { %v316_v50 = vsel %vm315_vm4, %v599_v44, %v312_v49 }
 0x114   : > { %504 = vpush %v316_v50 }
 0x145   : > { %s505_s17 = spop %504 }
 0x146   : > { %s325_s19 = smul.f32 %s505_s17, %s318_s10 }
 0x148   : > { %v326_v56 = vstv %s325_s19 }
 0x149   : > { %v327_v58 = vmul.f32 %v326_v56, %v321_v52  ;;  %v328_v59 = vmul.f32 %v326_v56, %v322_v53  ;;  %v329_v60 = vmul.f32 %v326_v56, %v323_v54  ;;  %v330_v61 = vmul.f32 %v326_v56, %v324_v55 }
 0x14b   : > { %v332_v62 = vadd.f32 %v331_v57, %v327_v58  ;;  %v333_v63 = vadd.f32 %v331_v57, %v328_v59  ;;  %v334_v4 = vadd.f32 %v331_v57, %v329_v60  ;;  %v335_v5 = vadd.f32 %v331_v57, %v330_v61 }
 0x14d   : > { %336 = vst.msk [vmem:[%s242_s30] sm:$0xff] %vm247_vm0, %v332_v62 }
 0x14e   : > { %337 = vst.msk [vmem:[%s242_s30 + $0x8] sm:$0xff] %vm247_vm0, %v333_v63 }
 0x14f   : > { %338 = vst.msk [vmem:[%s242_s30 + $0x10] sm:$0xff] %vm247_vm0, %v334_v4 }
 0x150   : > { %339 = vst.msk [vmem:[%s242_s30 + $0x18] sm:$0xff] %vm247_vm0, %v335_v5 }
 0x151   : > { %s497_s22 = sshll.u32 %s736_s16, 4  ;;  %s363_s23 = sshll.u32 %s242_s30, 4  ;;  %s364_s23 = int_to_ptr.vmem [resolvable:$true] %s363_s23 }
 0x152   : > { %s352_s8 = scalar_lea.hbm %s911_s3, %s497_s22  ;;  %s688_s29 = smov 256  }
 0x153   : > { %s365_s27 = sshll.u32 %s352_s8, 4  ;;  %523 = sst [smem:[#allocation13]] (%p767_p11), %s688_s29  ;;  %s366_s27 = int_to_ptr.hbm [resolvable:$true] %s365_s27 }
 0x154   : > { %s689_s20 = smov 1024   ;;  %s690_s5 = smov 2  }
 0x155   : > { %524 = sst [smem:[#allocation13 + $0x1]] (%p767_p11), %s689_s20  ;;  %s691_s16 = smov 128  }
 0x156   : > { %525 = sst [smem:[#allocation13 + $0x2]] (%p767_p11), %s690_s5  ;;  %s692_s6 = smov 8  }
 0x157   : > { %526 = sst [smem:[#allocation13 + $0x3]] (%p767_p11), %s691_s16  ;;  %s693_s7 = smov [#allocation12]  }
 0x158   : > { %527 = sst [smem:[#allocation13 + $0x4]] (%p767_p11), %s691_s16  ;;  %s694_s9 = smov 0  }
 0x159   : > { %528 = sst [smem:[#allocation13 + $0x5]] (%p767_p11), %s692_s6 }
 0x15a   : > { %529 = dma.general (%p767_p11), %s364_s23, 512, %s366_s27, %s341_s4, %s693_s7, [#allocation13], %s694_s9, 0  }
 0x15b PF: > { %p546_p3 = scmp.ge.s32.totalorder %s676_s15, 2  ;;  %s393_s10 = sand.u32 1, %s664_s12  }
 0x15c   : > { %s394_s11 = scalar_lea.sflag [#allocation4], %s393_s10 }
 0x15d   : > { %p539_p4 = pnand %p546_p3, %p771_p12 }
 0x15f   : > { %p540_p5 = pneg %p539_p4 }
 0x161   : > { %659 = dma.done.wait (%p540_p5), %s394_s11, 512  }
 0x162   : > { %661 = vsyncadd (%p540_p5), %s394_s11, 4294966784  ;;  %p18_p6 = scmp.ge.s32.totalorder %s740_s18, 6   ;;  %s917_s12 = smov %s668_s13 }
 0x163   : > { %s918_s13 = smov %s672_s14  ;;  %s919_s14 = smov %s752_s21 }
 0x164   : > { %s920_s15 = smov %s740_s18  ;;  %20 = sbr.rel (!%p18_p6) target bundleno = 7 (0x7), region = 97 }
 0x169   :  { %400 = vsyncpa [#allocation3], 1 }
 0x16a   :  { %402 = vsyncpa [#allocation3 + $0x1], 1 }
 0x16b   :  { %403 = vsyncpa [#allocation4], 1 }
 0x16c   :  { %405 = vsyncpa [#allocation4 + $0x1], 1 }
 0x16d   :  { %406 = vsyncpa [#allocation5], 1 }
 0x16e   :  { %408 = vsyncpa [#allocation5 + $0x1], 1 }
 0x16f   :  { %409 = vsyncpa [#allocation6], 1 }
 0x170   :  { %411 = vsyncpa [#allocation6 + $0x1], 1 }

</bundles_post_ra>
